<compile_context>
chip_gen: v6e
topology: v6e:2x2x1
jax: 0.10.0
libtpu: 0.0.40
codegen_flags: <defaults>
</compile_context>

<pallas_src>
import functools

import jax
import jax.numpy as jnp
from jax.experimental import pallas as pl
from jax.experimental.pallas import tpu as pltpu


def _round_up(v, m):
    return (v + m - 1) // m * m


def _cdiv(a, b):
    return -(-a // b)


def _std_kernel(x_ref, o_ref, shift_ref, sum_ref, sq_ref, *,
                inv_n, ts, s_total, ragged):
    # x_ref: (TM, TS) tile of the row-major (R, S) matrix (TS multiple of 128).
    # o_ref: (TM, 1) per-row std, written only on the last reduction step.
    # shift_ref: (TM, 1) f32 per-row shift (first spatial element).
    # sum_ref / sq_ref: (TM, 128) f32 lane-wise partial accumulators, resident
    # across the lane-reduction grid axis.
    k = pl.program_id(1)

    @pl.when(k == 0)
    def _init():
        shift_ref[...] = x_ref[:, 0:1].astype(jnp.float32)
        sum_ref[...] = jnp.zeros_like(sum_ref)
        sq_ref[...] = jnp.zeros_like(sq_ref)

    tm = x_ref.shape[0]
    shift = jnp.broadcast_to(shift_ref[...], (tm, 128))  # hoisted out of loop
    if ragged:
        lane = jax.lax.broadcasted_iota(jnp.int32, (tm, 128), 1)
        rem = s_total - k * ts  # number of valid lanes left in this tile

    s_acc = sum_ref[...]
    q_acc = sq_ref[...]
    for j in range(ts // 128):
        c = x_ref[:, j * 128:(j + 1) * 128].astype(jnp.float32) - shift
        if ragged:
            c = jnp.where(lane + (j * 128) < rem, c, 0.0)
        s_acc = s_acc + c
        q_acc = q_acc + c * c
    sum_ref[...] = s_acc
    sq_ref[...] = q_acc

    @pl.when(k == pl.num_programs(1) - 1)
    def _finalize():
        tot = jnp.sum(sum_ref[...], axis=-1, keepdims=True)    # E-sum of (x-s)
        totq = jnp.sum(sq_ref[...], axis=-1, keepdims=True)    # E-sum of (x-s)^2
        m = tot * inv_n
        var = totq * inv_n - m * m
        var = jnp.maximum(var, 0.0)  # guard tiny negative from rounding
        o_ref[...] = jnp.sqrt(var).astype(o_ref.dtype)


def std_operator(x, *, lane_tile=4096, per_buffer_bytes=16 * 1024 * 1024,
                 max_row_tile=8192, vmem_limit_bytes=48 * 1024 * 1024):
    """x: (N, C, H, W) -> (N, C, 1, 1), matching stdv_channels()."""
    N, C, H, W = x.shape
    R = N * C
    S = H * W
    itemsize = jnp.dtype(x.dtype).itemsize
    # Sublane alignment for the second-to-last block dim.
    row_align = 8 if itemsize >= 4 else (16 if itemsize == 2 else 32)

    # Lane tile: multiple of 128.  Small/medium S fits one lane block (the
    # reduction grid axis collapses to 1); larger S streams lane_tile chunks.
    # The ragged remainder is masked inside the kernel -- no wrapper padding.
    TS = min(_round_up(S, 128), _round_up(int(lane_tile), 128))
    ragged = (S % TS) != 0

    # Row tile: fill ~per_buffer_bytes per (double-buffered) input block,
    # capped so the (TM,128) scratch stays small and so the "parallel" row
    # axis has >= 2 slices when R allows (v7x megacore gets both cores busy).
    rows_fit = (per_buffer_bytes // (TS * itemsize)) // row_align * row_align
    rows_fit = max(row_align, min(rows_fit, max_row_tile))
    tm_cap = max(row_align, _round_up(_cdiv(R, 2), row_align))
    TM = min(rows_fit, _round_up(R, row_align), tm_cap)

    grid = (_cdiv(R, TM), _cdiv(S, TS))
    kernel = functools.partial(_std_kernel, inv_n=1.0 / float(S), ts=TS,
                               s_total=S, ragged=ragged)

    x2d = x.reshape(R, S)  # contiguous view; no HBM data movement

    out2d = pl.pallas_call(
        kernel,
        out_shape=jax.ShapeDtypeStruct((R, 1), x.dtype),
        grid=grid,
        in_specs=[pl.BlockSpec((TM, TS), lambda i, k: (i, k))],
        out_specs=pl.BlockSpec((TM, 1), lambda i, k: (i, 0)),
        scratch_shapes=[pltpu.VMEM((TM, 1), jnp.float32),
                        pltpu.VMEM((TM, 128), jnp.float32),
                        pltpu.VMEM((TM, 128), jnp.float32)],
        compiler_params=pltpu.CompilerParams(
            dimension_semantics=("parallel", "arbitrary"),
            vmem_limit_bytes=vmem_limit_bytes,
        ),
        cost_estimate=pl.CostEstimate(
            flops=5 * R * S,
            transcendentals=R,
            bytes_accessed=R * S * itemsize + R * itemsize,
        ),
    )(x2d)

    return out2d.reshape(N, C, 1, 1)


def _std_ref(x):
    # pure-JAX reference mirroring the PyTorch code
    m = jnp.mean(x, axis=(2, 3), keepdims=True)
    v = jnp.mean((x - m) ** 2, axis=(2, 3), keepdims=True)
    return jnp.sqrt(v)


if __name__ == "__main__":
    key = jax.random.PRNGKey(0)

    # Small shape consistent with the module.
    x = jax.random.normal(key, (2, 4, 16, 16), dtype=jnp.float32)
    out = std_operator(x)
    jax.block_until_ready(out)
    ref = _std_ref(x)
    assert out.shape == (2, 4, 1, 1), out.shape
    assert jnp.allclose(out, ref, atol=1e-5, rtol=1e-5), (out, ref)

    # Non-aligned shape: exercises in-kernel lane masking + partial row blocks.
    x2 = jax.random.normal(jax.random.PRNGKey(1), (2, 3, 7, 9), dtype=jnp.float32)
    out2 = std_operator(x2)
    jax.block_until_ready(out2)
    ref2 = _std_ref(x2)
    assert out2.shape == (2, 3, 1, 1), out2.shape
    assert jnp.allclose(out2, ref2, atol=1e-5, rtol=1e-5), (out2, ref2)

    # Larger spatial extent: exercises the streamed multi-lane-tile path.
    x3 = jax.random.normal(jax.random.PRNGKey(2), (2, 4, 80, 80), dtype=jnp.float32)
    out3 = std_operator(x3)
    jax.block_until_ready(out3)
    ref3 = _std_ref(x3)
    assert out3.shape == (2, 4, 1, 1), out3.shape
    assert jnp.allclose(out3, ref3, atol=1e-4, rtol=1e-4), (out3, ref3)

    print("KERNEL_OK")
</pallas_src>

<mosaic_0001>
module attributes {stable_mosaic.version = 11 : i64} {
  func.func @_std_kernel(%arg0: i32, %arg1: i32, %arg2: memref<8x256xf32, #tpu.memory_space<vmem>>, %arg3: memref<8x1xf32, #tpu.memory_space<vmem>>, %arg4: memref<8x1xf32, #tpu.memory_space<vmem>>, %arg5: memref<8x128xf32, #tpu.memory_space<vmem>>, %arg6: memref<8x128xf32, #tpu.memory_space<vmem>>) attributes {dimension_semantics = [#tpu.dimension_semantics<parallel>, #tpu.dimension_semantics<arbitrary>], iteration_bounds = array<i64: 1, 1>, scalar_prefetch = 0 : i64, scratch_operands = 3 : i64, tpu.core_type = #tpu.core_type<tc>, window_params = [{transform_indices = @transform_0, window_bounds = array<i64: 8, 256>}, {transform_indices = @transform_1, window_bounds = array<i64: 8, 1>}]} {
    %c0_i32 = arith.constant 0 : i32
    %0 = arith.cmpi eq, %arg1, %c0_i32 : i32
    %1 = arith.extui %0 : i1 to i32
    %c0_i32_0 = arith.constant 0 : i32
    %2 = arith.cmpi ne, %1, %c0_i32_0 : i32
    scf.if %2 {
      %c0_15 = arith.constant 0 : index
      %c0_16 = arith.constant 0 : index
      %23 = vector.load %arg2[%c0_15, %c0_16] : memref<8x256xf32, #tpu.memory_space<vmem>>, vector<8x1xf32>
      %c0_17 = arith.constant 0 : index
      %c0_18 = arith.constant 0 : index
      %24 = vector.load %arg4[%c0_17, %c0_18] : memref<8x1xf32, #tpu.memory_space<vmem>>, vector<8x1xf32>
      tpu.vector_store %arg4[%c0_17, %c0_18], %23 {strides = array<i32>} : memref<8x1xf32, #tpu.memory_space<vmem>>, vector<8x1xf32>,
      %cst = arith.constant 0.000000e+00 : f32
      %25 = vector.broadcast %cst : f32 to vector<8x128xf32>
      %c0_19 = arith.constant 0 : index
      %c0_20 = arith.constant 0 : index
      %26 = vector.load %arg5[%c0_19, %c0_20] : memref<8x128xf32, #tpu.memory_space<vmem>>, vector<8x128xf32>
      tpu.vector_store %arg5[%c0_19, %c0_20], %25 {strides = array<i32>} : memref<8x128xf32, #tpu.memory_space<vmem>>, vector<8x128xf32>,
      %cst_21 = arith.constant 0.000000e+00 : f32
      %27 = vector.broadcast %cst_21 : f32 to vector<8x128xf32>
      %c0_22 = arith.constant 0 : index
      %c0_23 = arith.constant 0 : index
      %28 = vector.load %arg6[%c0_22, %c0_23] : memref<8x128xf32, #tpu.memory_space<vmem>>, vector<8x128xf32>
      tpu.vector_store %arg6[%c0_22, %c0_23], %27 {strides = array<i32>} : memref<8x128xf32, #tpu.memory_space<vmem>>, vector<8x128xf32>,
    } else {
    }
    %c0 = arith.constant 0 : index
    %c0_1 = arith.constant 0 : index
    %3 = vector.load %arg4[%c0, %c0_1] : memref<8x1xf32, #tpu.memory_space<vmem>>, vector<8x1xf32>
    %4 = vector.shape_cast %3 : vector<8x1xf32> to vector<8x1xf32>
    %5 = vector.broadcast %4 : vector<8x1xf32> to vector<8x128xf32>
    %c0_2 = arith.constant 0 : index
    %c0_3 = arith.constant 0 : index
    %6 = vector.load %arg5[%c0_2, %c0_3] : memref<8x128xf32, #tpu.memory_space<vmem>>, vector<8x128xf32>
    %c0_4 = arith.constant 0 : index
    %c0_5 = arith.constant 0 : index
    %7 = vector.load %arg6[%c0_4, %c0_5] : memref<8x128xf32, #tpu.memory_space<vmem>>, vector<8x128xf32>
    %c0_6 = arith.constant 0 : index
    %c0_7 = arith.constant 0 : index
    %8 = vector.load %arg2[%c0_6, %c0_7] : memref<8x256xf32, #tpu.memory_space<vmem>>, vector<8x128xf32>
    %9 = arith.subf %8, %5 : vector<8x128xf32>
    %10 = arith.addf %6, %9 : vector<8x128xf32>
    %11 = arith.mulf %9, %9 : vector<8x128xf32>
    %12 = arith.addf %7, %11 : vector<8x128xf32>
    %c0_8 = arith.constant 0 : index
    %c128 = arith.constant 128 : index
    %13 = vector.load %arg2[%c0_8, %c128] : memref<8x256xf32, #tpu.memory_space<vmem>>, vector<8x128xf32>
    %14 = arith.subf %13, %5 : vector<8x128xf32>
    %15 = arith.addf %10, %14 : vector<8x128xf32>
    %16 = arith.mulf %14, %14 : vector<8x128xf32>
    %17 = arith.addf %12, %16 : vector<8x128xf32>
    %c0_9 = arith.constant 0 : index
    %c0_10 = arith.constant 0 : index
    %18 = vector.load %arg5[%c0_9, %c0_10] : memref<8x128xf32, #tpu.memory_space<vmem>>, vector<8x128xf32>
    tpu.vector_store %arg5[%c0_9, %c0_10], %15 {strides = array<i32>} : memref<8x128xf32, #tpu.memory_space<vmem>>, vector<8x128xf32>,
    %c0_11 = arith.constant 0 : index
    %c0_12 = arith.constant 0 : index
    %19 = vector.load %arg6[%c0_11, %c0_12] : memref<8x128xf32, #tpu.memory_space<vmem>>, vector<8x128xf32>
    tpu.vector_store %arg6[%c0_11, %c0_12], %17 {strides = array<i32>} : memref<8x128xf32, #tpu.memory_space<vmem>>, vector<8x128xf32>,
    %c0_i32_13 = arith.constant 0 : i32
    %20 = arith.cmpi eq, %arg1, %c0_i32_13 : i32
    %21 = arith.extui %20 : i1 to i32
    %c0_i32_14 = arith.constant 0 : i32
    %22 = arith.cmpi ne, %21, %c0_i32_14 : i32
    scf.if %22 {
      %c0_15 = arith.constant 0 : index
      %c0_16 = arith.constant 0 : index
      %23 = vector.load %arg5[%c0_15, %c0_16] : memref<8x128xf32, #tpu.memory_space<vmem>>, vector<8x128xf32>
      %cst = arith.constant dense<0.000000e+00> : vector<8xf32>
      %24 = vector.multi_reduction <add>, %23, %cst [1] : vector<8x128xf32> to vector<8xf32>
      %25 = vector.shape_cast %24 : vector<8xf32> to vector<8x1xf32>
      %c0_17 = arith.constant 0 : index
      %c0_18 = arith.constant 0 : index
      %26 = vector.load %arg6[%c0_17, %c0_18] : memref<8x128xf32, #tpu.memory_space<vmem>>, vector<8x128xf32>
      %cst_19 = arith.constant dense<0.000000e+00> : vector<8xf32>
      %27 = vector.multi_reduction <add>, %26, %cst_19 [1] : vector<8x128xf32> to vector<8xf32>
      %28 = vector.shape_cast %27 : vector<8xf32> to vector<8x1xf32>
      %cst_20 = arith.constant 3.906250e-03 : f32
      %29 = vector.broadcast %cst_20 : f32 to vector<8x1xf32>
      %30 = arith.mulf %25, %29 : vector<8x1xf32>
      %cst_21 = arith.constant 3.906250e-03 : f32
      %31 = vector.broadcast %cst_21 : f32 to vector<8x1xf32>
      %32 = arith.mulf %28, %31 : vector<8x1xf32>
      %33 = arith.mulf %30, %30 : vector<8x1xf32>
      %34 = arith.subf %32, %33 : vector<8x1xf32>
      %cst_22 = arith.constant 0.000000e+00 : f32
      %35 = vector.broadcast %cst_22 : f32 to vector<8x1xf32>
      %36 = arith.maximumf %34, %35 : vector<8x1xf32>
      %37 = math.sqrt %36 : vector<8x1xf32>
      %c0_23 = arith.constant 0 : index
      %c0_24 = arith.constant 0 : index
      %38 = vector.load %arg3[%c0_23, %c0_24] : memref<8x1xf32, #tpu.memory_space<vmem>>, vector<8x1xf32>
      tpu.vector_store %arg3[%c0_23, %c0_24], %37 {strides = array<i32>} : memref<8x1xf32, #tpu.memory_space<vmem>>, vector<8x1xf32>,
    } else {
    }
    return
  }
  func.func @transform_0(%arg0: i32, %arg1: i32) -> (i32, i32) {
    %c0_i32 = arith.constant 0 : i32
    return %arg0, %arg1 : i32, i32
  }
  func.func @transform_1(%arg0: i32, %arg1: i32) -> (i32, i32) {
    %c0_i32 = arith.constant 0 : i32
    %c0_i32_0 = arith.constant 0 : i32
    return %arg0, %c0_i32 : i32, i32
  }
}

</mosaic_0001>

<bundles_post_ra>
// kernel: tpu_custom_call.1
= control target key start
LH: loop header
LB: loop body
LE: loop exit
PB: predicated region body
PF: predicated region fallthrough
CT: control target
= control target key end

     0   :  { %6 = vsyncpa [#allocation6], 0  ;;  %s104_s6 = smov [#allocation5]   ;;  %s124_s0 = inlined_call_operand.hbm [shape: f32[8,256], index: 0, kind: input, shape index: {}]   ;;  %s125_s1 = inlined_call_operand.vmem [shape: f32[8,1], index: 1, kind: output, shape index: {}]  }
   0x1   :  { %s13_s7 = sshll.u32 %s104_s6, 4  ;;  %s14_s7 = int_to_ptr.vmem [resolvable:$true] %s13_s7 }
   0x2   :  { %s90_s8 = scalar_lea.vmem %s14_s7, 256  ;;  %p95_p1 = scmp.lt.s32.totalorder %s14_s7, %s14_s7 }
   0x3   :  { %p91_p0 = scmp.ne.s32.totalorder %s14_s7, %s90_s8  ;;  %p96_p2 = scmp.lt.s32.totalorder %s90_s8, %s90_s8 }
   0x5   :  { %p97_p3 = por %p96_p2, %p95_p1 }
   0x7   :  { %p98_p4 = pnand %p97_p3, %p91_p0 }
   0x9   :  { %101 = shalt.err (!%p98_p4)
}
   0xa   :  { %16 = dma.hbm_to_vmem [thread:$0]  %s124_s0, 256, %s14_s7, [#allocation6]  }
   0xb   :  { %102 = dma.done.wait [#allocation6], 256  }
   0xc   :  { %103 = vsyncadd [#allocation6], 4294967040  ;;  %v105_v0 = vmov 0   ;;  %vm25_vm0 = vcmask 7168   ;;  %v24_v1 = vld [vmem:[#allocation5] sm:$0xff]  ;;  %v42_v3 = vld [vmem:[#allocation5 + $0x8] sm:$0xff] }
   0xd   :  { %79 = vset.pattern.permute.xlu0 %v105_v0  ;;  %26 = vst.msk [vmem:[#allocation2] sm:$0xff] %vm25_vm0, %v24_v1 }
  0x14   :  { %v29_v2 = vld [vmem:[#allocation2] sm:$0xff] }
  0x15   :  { %32 = vperm.xlu0 %79, %v29_v2  }
  0x90   :  { %v33_v4 = vpop.permute.xlu0 %32 }
  0x91   :  { %v38_v5 = vsub.f32 %v24_v1, %v33_v4  ;;  %v43_v6 = vsub.f32 %v42_v3, %v33_v4 }
  0x93   :  { %v44_v7 = vadd.f32 %v43_v6, %v38_v5  ;;  %v40_v8 = vmul.f32 %v38_v5, %v38_v5  ;;  %v45_v9 = vmul.f32 %v43_v6, %v43_v6 }
  0x95   :  { %53 = vadd.xlane.f32.xlu0 %v44_v7  ;;  %v46_v10 = vadd.f32 %v45_v9, %v40_v8 }
  0x97   :  { %56 = vadd.xlane.f32.xlu1 %v46_v10 }
 0x11e   :  { %v54_v11 = vpop.xlane.xlu0 %53 }
 0x11f   :  { %v58_v12 = vmul.f32 0.00390625, %v54_v11 }
 0x120   :  { %v57_v13 = vpop.xlane.xlu1 %56 }
 0x121   :  { %v60_v14 = vmul.f32 %v58_v12, %v58_v12  ;;  %v59_v15 = vmul.f32 0.00390625, %v57_v13 }
 0x123   :  { %v61_v16 = vsub.f32 %v59_v15, %v60_v14 }
 0x125   :  { %v62_v17 = vmax.f32 %v61_v16, 0.0 }
 0x127   :  { %80 = vrsqrt.f32 %v62_v17  ;;  %vm65_vm1 = vcmp.eq.f32.partialorder %v62_v17, inf  ;;  %v68_v20 = vand.u32 2147483648, %v62_v17  ;;  %vm67_vm2 = vcmp.eq.f32.partialorder %v62_v17, 0.0 }
 0x134   :  { %v81_v18 = vpop.eup %80 }
 0x135   :  { %v64_v19 = vmul.f32 %v81_v18, %v62_v17 }
 0x137   :  { %v66_v21 = vsel %vm65_vm1, %v62_v17, %v64_v19 }
 0x138   :  { %v69_v22 = vsel %vm67_vm2, %v68_v20, %v66_v21 }
 0x139   :  { %71 = vst.msk [vmem:[%s125_s1] sm:$0xff] %vm25_vm0, %v69_v22 }
 0x13a   :  { %76 = vsyncpa [#allocation6], 1 }

</bundles_post_ra>
